<compile_context>
chip_gen: v5e
topology: v5e:2x2
jax: 0.10.0
libtpu: 0.0.40
codegen_flags: <defaults>
</compile_context>

<pallas_src>
import jax
import jax.numpy as jnp
import numpy as np
from jax.experimental import pallas as pl
from jax.experimental.pallas import tpu as pltpu

KSIZE = 5
PAD = 2


# --------------------------------------------------------------------------
# Sizing helpers (padded (8,128)-tile footprints, generation aware)
# --------------------------------------------------------------------------
def _round_up(v, m):
    return (v + m - 1) // m * m


def _vmem_capacity_bytes():
    """Physical VMEM per TensorCore; conservative fallback if the query fails."""
    try:
        return int(pltpu.get_tpu_info().vmem_capacity_bytes)
    except Exception:
        return 64 << 20            # v7x-sized fallback: safe on every generation


def _step_vmem_bytes(n_block, G, PC, Wg, mm_itemsize):
    """Conservative ((8,128)-tile padded) VMEM footprint of one grid step."""
    rows = _round_up(max(n_block * G, 1), 8)
    lane = _round_up(PC, 128)
    klane = _round_up(Wg * PC, 128)
    blk_f32 = rows * lane * 4
    io = 3 * 2 * blk_f32                                        # x, g, out (dbl-buf)
    wts = 2 * 2 * _round_up(Wg * PC, 8) * lane * mm_itemsize    # w1, w2 (dbl-buf)
    tmps = 2 * rows * klane * mm_itemsize                       # taps + im2col LHS
    tmps += 4 * blk_f32                                         # relu/h1/h2/residual
    return io + wts + tmps


def _choose_n_block(N, G, PC, Wg, mm_itemsize, vmem_cap):
    """Samples folded per grid step."""
    budget = int(vmem_cap * 0.45)
    small_vmem = vmem_cap <= (64 << 20)       # v7x-class: 64 MiB per TensorCore
    if small_vmem and N >= 4:
        want = max(1, N // 4)   # >=4 grid steps -> 2 per megacore half (overlap)
    else:
        want = N                # v5e/v6e: single TC, fold the whole batch
    for nb in range(min(want, N), 0, -1):
        if N % nb:
            continue
        if nb > 1 and _step_vmem_bytes(nb, G, PC, Wg, mm_itemsize) > budget:
            continue
        if nb != N and (nb * G) % 8 != 0:     # keep block rows sublane-aligned
            continue
        return nb
    return N


# --------------------------------------------------------------------------
# Weight packing: conv taps -> one block-banded matmul RHS
# --------------------------------------------------------------------------
def _pack_conv_weight(w_kic, P, halo, dtype):
    """(K, C_in, C_out) -> (W*P*C_in, P*C_out) block-banded RHS.

    Row index q*C_in + c_in is window position q (left halo of halo*P
    positions included); column index p*C_out + c_out is output position p of
    the group.  Matches the im2col column order built inside the kernel.
    """
    K, Cin, Cout = w_kic.shape
    Wg = 2 * halo + 1
    big = jnp.zeros((Wg * P * Cin, P * Cout), jnp.float32)
    for p in range(P):
        for k in range(K):
            q = p + k - PAD + halo * P
            big = big.at[q * Cin:(q + 1) * Cin,
                         p * Cout:(p + 1) * Cout].set(w_kic[k])
    return big.astype(dtype)


# --------------------------------------------------------------------------
# Kernel
# --------------------------------------------------------------------------
def _make_resblock_kernel(G, halo, mm_dtype):
    Wg = 2 * halo + 1

    def kernel(x_ref, g_ref, w1_ref, b1_ref, w2_ref, b2_ref, o_ref):
        # x_ref/o_ref: (Mb, PC) f32, lane-dense packed rows (PC = P*C lanes)
        # g_ref:       (Mb, PC) int32, group index of each row within its sample
        # w*_ref:      (Wg*PC, PC) matmul dtype (pre-cast in wrapper)
        # b*_ref:      (1, PC) f32
        Mb, PC = x_ref.shape
        x = x_ref[...]                       # f32
        g = g_ref[...]                       # int32

        def shifted(hb, d):
            # out[r] = hb[r + d] within the same sample, zeros outside it.
            if d == 0:
                return hb
            if d > 0:
                t = jnp.concatenate(
                    [hb[d:, :], jnp.zeros((d, PC), hb.dtype)], axis=0)
                return jnp.where(g < G - d, t, jnp.zeros_like(t))
            t = jnp.concatenate(
                [jnp.zeros((-d, PC), hb.dtype), hb[:Mb + d, :]], axis=0)
            return jnp.where(g >= -d, t, jnp.zeros_like(t))

        def conv(h, w_ref, b_ref):
            # ReLU in f32 (v5e has no bf16 VPU); single cast at the MXU edge.
            hb = jnp.maximum(h, 0.0).astype(mm_dtype)
            lhs = jnp.concatenate(
                [shifted(hb, j - halo) for j in range(Wg)], axis=-1)
            out = jnp.dot(lhs, w_ref[...], preferred_element_type=jnp.float32)
            return out + b_ref[...]          # f32 accumulate + f32 bias

        h1 = conv(x, w1_ref, b1_ref)
        h2 = conv(h1, w2_ref, b2_ref)
        o_ref[...] = x + 0.3 * h2            # residual in f32, lane-dense store

    return kernel


# --------------------------------------------------------------------------
# Wrapper
# --------------------------------------------------------------------------
def resblock_pallas(x_nlc, w1, b1, w2, b2, *, n_block=None,
                    matmul_dtype=jnp.bfloat16):
    """x_nlc: (N, L, C) f32; w*: (KSIZE, C_in, C_out); b*: (C,) or (1, C)."""
    N, L, C = x_nlc.shape

    # Position-packing factor: P consecutive positions share the 128-lane axis
    # (P*C == 128) whenever the shapes allow; otherwise fall back to P=1.
    if C <= 128 and 128 % C == 0 and L % (128 // C) == 0:
        P = 128 // C
    else:
        P = 1
    G = L // P                               # position-groups per sample
    PC = P * C                               # lane width of one packed row
    halo = -(-PAD // P)                      # ceil(PAD / P) groups of halo
    Wg = 2 * halo + 1                        # groups in the conv window

    mm_itemsize = jnp.dtype(matmul_dtype).itemsize
    vmem_cap = _vmem_capacity_bytes()
    if n_block is None:
        n_block = _choose_n_block(N, G, PC, Wg, mm_itemsize, vmem_cap)
    assert N % n_block == 0, "n_block must divide N"
    grid = (N // n_block,)
    rows_blk = n_block * G

    # Matmul RHS / bias built once, already in the matmul dtype (no in-kernel cast).
    w1_big = _pack_conv_weight(w1, P, halo, matmul_dtype)
    w2_big = _pack_conv_weight(w2, P, halo, matmul_dtype)
    b1_p = jnp.tile(jnp.asarray(b1, jnp.float32).reshape(1, C), (1, P))
    b2_p = jnp.tile(jnp.asarray(b2, jnp.float32).reshape(1, C), (1, P))

    # Lane-dense packed views of the HBM arrays + per-row group index.
    x_packed = x_nlc.reshape(N * G, PC)
    g_arr = jnp.broadcast_to(
        jnp.arange(G, dtype=jnp.int32)[None, :, None], (N, G, PC)
    ).reshape(N * G, PC)

    needed = _step_vmem_bytes(n_block, G, PC, Wg, mm_itemsize)
    vmem_limit = int(min(max(2 * needed, 8 << 20), int(vmem_cap * 0.8)))

    out_packed = pl.pallas_call(
        _make_resblock_kernel(G, halo, matmul_dtype),
        out_shape=jax.ShapeDtypeStruct((N * G, PC), jnp.float32),
        grid_spec=pltpu.PrefetchScalarGridSpec(
            num_scalar_prefetch=0,
            grid=grid,
            in_specs=[
                pl.BlockSpec((rows_blk, PC), lambda i: (i, 0)),     # x (packed)
                pl.BlockSpec((rows_blk, PC), lambda i: (i, 0)),     # group index
                pl.BlockSpec((Wg * PC, PC), lambda i: (0, 0)),      # w1 (resident)
                pl.BlockSpec((1, PC), lambda i: (0, 0)),            # b1
                pl.BlockSpec((Wg * PC, PC), lambda i: (0, 0)),      # w2 (resident)
                pl.BlockSpec((1, PC), lambda i: (0, 0)),            # b2
            ],
            out_specs=pl.BlockSpec((rows_blk, PC), lambda i: (i, 0)),
        ),
        compiler_params=pltpu.CompilerParams(
            dimension_semantics=("parallel",),
            vmem_limit_bytes=vmem_limit,
        ),
    )(x_packed, g_arr, w1_big, b1_p, w2_big, b2_p)

    return out_packed.reshape(N, L, C)


# --------------------------------------------------------------------------
# Plain-JAX reference (mm_dtype mimics the kernel's MXU-operand precision)
# --------------------------------------------------------------------------
def resblock_reference(x_nlc, w1, b1, w2, b2, mm_dtype=jnp.float32):
    def conv(h, w, b):
        L = h.shape[1]
        hp = jnp.pad(h.astype(mm_dtype), ((0, 0), (PAD, PAD), (0, 0)))
        out = sum(jnp.einsum('nlc,cd->nld', hp[:, k:k + L, :],
                             w[k].astype(mm_dtype),
                             preferred_element_type=jnp.float32)
                  for k in range(KSIZE))
        return out + jnp.asarray(b, jnp.float32).reshape(1, 1, -1)
    y = conv(jax.nn.relu(x_nlc), w1, b1)
    y = conv(jax.nn.relu(y), w2, b2)
    return x_nlc + 0.3 * y


if __name__ == "__main__":
    # ResBlock(hidden=32) on a small sequence: batch=2, hidden=32, length=16.
    N, C, L = 2, 32, 16

    key = jax.random.PRNGKey(0)
    kx, kw1, kb1, kw2, kb2 = jax.random.split(key, 5)

    # PyTorch-native layouts: input (N, C, L), weights (C_out, C_in, K), bias (C,)
    x_ncl = jax.random.normal(kx, (N, C, L), dtype=jnp.float32)
    w1_t = jax.random.normal(kw1, (C, C, KSIZE), dtype=jnp.float32) * 0.1
    b1_t = jax.random.normal(kb1, (C,), dtype=jnp.float32) * 0.1
    w2_t = jax.random.normal(kw2, (C, C, KSIZE), dtype=jnp.float32) * 0.1
    b2_t = jax.random.normal(kb2, (C,), dtype=jnp.float32) * 0.1

    # Glue: channels-last input, (K, C_in, C_out) weights.
    x_nlc = jnp.transpose(x_ncl, (0, 2, 1))
    w1 = jnp.transpose(w1_t, (2, 1, 0))
    w2 = jnp.transpose(w2_t, (2, 1, 0))
    b1 = b1_t.reshape(1, C)
    b2 = b2_t.reshape(1, C)

    out_nlc = resblock_pallas(x_nlc, w1, b1, w2, b2)   # bf16 MXU, f32 accumulate
    out_nlc = jax.block_until_ready(out_nlc)

    # 1) Tight structural check vs. a reference using the same mixed precision
    #    (bf16 MXU operands, f32 accumulation / elementwise).
    ref_bf16 = resblock_reference(x_nlc, w1, b1, w2, b2, mm_dtype=jnp.bfloat16)
    np.testing.assert_allclose(np.asarray(out_nlc), np.asarray(ref_bf16),
                               rtol=2e-3, atol=2e-3)

    # 2) End-to-end check vs. the full-f32 reference (bf16 rounding only).
    ref_f32 = resblock_reference(x_nlc, w1, b1, w2, b2, mm_dtype=jnp.float32)
    np.testing.assert_allclose(np.asarray(out_nlc), np.asarray(ref_f32),
                               rtol=3e-2, atol=3e-2)

    print("KERNEL_OK")
</pallas_src>

<mosaic_0001>
module attributes {stable_mosaic.version = 11 : i64} {
  func.func @kernel(%arg0: i32, %arg1: memref<8x128xf32, #tpu.memory_space<vmem>>, %arg2: memref<8x128xi32, #tpu.memory_space<vmem>>, %arg3: memref<384x128xbf16, #tpu.memory_space<vmem>>, %arg4: memref<1x128xf32, #tpu.memory_space<vmem>>, %arg5: memref<384x128xbf16, #tpu.memory_space<vmem>>, %arg6: memref<1x128xf32, #tpu.memory_space<vmem>>, %arg7: memref<8x128xf32, #tpu.memory_space<vmem>>) attributes {dimension_semantics = [#tpu.dimension_semantics<parallel>], iteration_bounds = array<i64: 1>, scalar_prefetch = 0 : i64, scratch_operands = 0 : i64, tpu.core_type = #tpu.core_type<tc>, window_params = [{transform_indices = @transform_0, window_bounds = array<i64: 8, 128>}, {transform_indices = @transform_1, window_bounds = array<i64: 8, 128>}, {pipeline_mode = #tpu.pipeline_mode<synchronous>, transform_indices = @transform_2, window_bounds = array<i64: 384, 128>}, {pipeline_mode = #tpu.pipeline_mode<synchronous>, transform_indices = @transform_3, window_bounds = array<i64: 1, 128>}, {pipeline_mode = #tpu.pipeline_mode<synchronous>, transform_indices = @transform_4, window_bounds = array<i64: 384, 128>}, {pipeline_mode = #tpu.pipeline_mode<synchronous>, transform_indices = @transform_5, window_bounds = array<i64: 1, 128>}, {transform_indices = @transform_6, window_bounds = array<i64: 8, 128>}]} {
    %c0 = arith.constant 0 : index
    %c0_0 = arith.constant 0 : index
    %0 = vector.load %arg1[%c0, %c0_0] : memref<8x128xf32, #tpu.memory_space<vmem>>, vector<8x128xf32>
    %c0_1 = arith.constant 0 : index
    %c0_2 = arith.constant 0 : index
    %1 = vector.load %arg2[%c0_1, %c0_2] : memref<8x128xi32, #tpu.memory_space<vmem>>, vector<8x128xi32>
    %cst = arith.constant 0.000000e+00 : f32
    %2 = vector.broadcast %cst : f32 to vector<8x128xf32>
    %3 = arith.maximumf %0, %2 : vector<8x128xf32>
    %4 = arith.truncf %3 : vector<8x128xf32> to vector<8x128xbf16>
    %cst_3 = arith.constant 0.000000e+00 : bf16
    %5 = vector.broadcast %cst_3 : bf16 to vector<1x128xbf16>
    %6 = vector.extract_strided_slice %4 {offsets = [0, 0], sizes = [7, 128], strides = [1, 1]} : vector<8x128xbf16> to vector<7x128xbf16>
    %7 = tpu.concatenate %5, %6 in 0 : vector<1x128xbf16>, vector<7x128xbf16> -> vector<8x128xbf16>
    %c1_i32 = arith.constant 1 : i32
    %8 = vector.broadcast %c1_i32 : i32 to vector<8x128xi32>
    %9 = arith.cmpi sge, %1, %8 : vector<8x128xi32>
    %cst_4 = arith.constant 0.000000e+00 : bf16
    %10 = vector.broadcast %cst_4 : bf16 to vector<8x128xbf16>
    %11 = arith.select %9, %7, %10 : vector<8x128xi1>, vector<8x128xbf16>
    %12 = vector.extract_strided_slice %4 {offsets = [1, 0], sizes = [7, 128], strides = [1, 1]} : vector<8x128xbf16> to vector<7x128xbf16>
    %cst_5 = arith.constant 0.000000e+00 : bf16
    %13 = vector.broadcast %cst_5 : bf16 to vector<1x128xbf16>
    %14 = tpu.concatenate %12, %13 in 0 : vector<7x128xbf16>, vector<1x128xbf16> -> vector<8x128xbf16>
    %c3_i32 = arith.constant 3 : i32
    %15 = vector.broadcast %c3_i32 : i32 to vector<8x128xi32>
    %16 = arith.cmpi slt, %1, %15 : vector<8x128xi32>
    %cst_6 = arith.constant 0.000000e+00 : bf16
    %17 = vector.broadcast %cst_6 : bf16 to vector<8x128xbf16>
    %18 = arith.select %16, %14, %17 : vector<8x128xi1>, vector<8x128xbf16>
    %19 = tpu.concatenate %11, %4, %18 in 1 : vector<8x128xbf16>, vector<8x128xbf16>, vector<8x128xbf16> -> vector<8x384xbf16>
    %c0_7 = arith.constant 0 : index
    %c0_8 = arith.constant 0 : index
    %20 = vector.load %arg3[%c0_7, %c0_8] : memref<384x128xbf16, #tpu.memory_space<vmem>>, vector<384x128xbf16>
    %cst_9 = arith.constant dense<0.000000e+00> : vector<8x128xf32>
    %21 = tpu.matmul %19, %20, %cst_9 {dimension_numbers = #tpu.dot_dimension_numbers<[1], [0], [0], [1], [0, 0, 1, 1], [], []>} : vector<8x384xbf16>, vector<384x128xbf16>, vector<8x128xf32> -> vector<8x128xf32>
    %c0_10 = arith.constant 0 : index
    %c0_11 = arith.constant 0 : index
    %22 = vector.load %arg4[%c0_10, %c0_11] : memref<1x128xf32, #tpu.memory_space<vmem>>, vector<1x128xf32>
    %23 = vector.broadcast %22 : vector<1x128xf32> to vector<8x128xf32>
    %24 = arith.addf %21, %23 : vector<8x128xf32>
    %cst_12 = arith.constant 0.000000e+00 : f32
    %25 = vector.broadcast %cst_12 : f32 to vector<8x128xf32>
    %26 = arith.maximumf %24, %25 : vector<8x128xf32>
    %27 = arith.truncf %26 : vector<8x128xf32> to vector<8x128xbf16>
    %cst_13 = arith.constant 0.000000e+00 : bf16
    %28 = vector.broadcast %cst_13 : bf16 to vector<1x128xbf16>
    %29 = vector.extract_strided_slice %27 {offsets = [0, 0], sizes = [7, 128], strides = [1, 1]} : vector<8x128xbf16> to vector<7x128xbf16>
    %30 = tpu.concatenate %28, %29 in 0 : vector<1x128xbf16>, vector<7x128xbf16> -> vector<8x128xbf16>
    %c1_i32_14 = arith.constant 1 : i32
    %31 = vector.broadcast %c1_i32_14 : i32 to vector<8x128xi32>
    %32 = arith.cmpi sge, %1, %31 : vector<8x128xi32>
    %cst_15 = arith.constant 0.000000e+00 : bf16
    %33 = vector.broadcast %cst_15 : bf16 to vector<8x128xbf16>
    %34 = arith.select %32, %30, %33 : vector<8x128xi1>, vector<8x128xbf16>
    %35 = vector.extract_strided_slice %27 {offsets = [1, 0], sizes = [7, 128], strides = [1, 1]} : vector<8x128xbf16> to vector<7x128xbf16>
    %cst_16 = arith.constant 0.000000e+00 : bf16
    %36 = vector.broadcast %cst_16 : bf16 to vector<1x128xbf16>
    %37 = tpu.concatenate %35, %36 in 0 : vector<7x128xbf16>, vector<1x128xbf16> -> vector<8x128xbf16>
    %c3_i32_17 = arith.constant 3 : i32
    %38 = vector.broadcast %c3_i32_17 : i32 to vector<8x128xi32>
    %39 = arith.cmpi slt, %1, %38 : vector<8x128xi32>
    %cst_18 = arith.constant 0.000000e+00 : bf16
    %40 = vector.broadcast %cst_18 : bf16 to vector<8x128xbf16>
    %41 = arith.select %39, %37, %40 : vector<8x128xi1>, vector<8x128xbf16>
    %42 = tpu.concatenate %34, %27, %41 in 1 : vector<8x128xbf16>, vector<8x128xbf16>, vector<8x128xbf16> -> vector<8x384xbf16>
    %c0_19 = arith.constant 0 : index
    %c0_20 = arith.constant 0 : index
    %43 = vector.load %arg5[%c0_19, %c0_20] : memref<384x128xbf16, #tpu.memory_space<vmem>>, vector<384x128xbf16>
    %cst_21 = arith.constant dense<0.000000e+00> : vector<8x128xf32>
    %44 = tpu.matmul %42, %43, %cst_21 {dimension_numbers = #tpu.dot_dimension_numbers<[1], [0], [0], [1], [0, 0, 1, 1], [], []>} : vector<8x384xbf16>, vector<384x128xbf16>, vector<8x128xf32> -> vector<8x128xf32>
    %c0_22 = arith.constant 0 : index
    %c0_23 = arith.constant 0 : index
    %45 = vector.load %arg6[%c0_22, %c0_23] : memref<1x128xf32, #tpu.memory_space<vmem>>, vector<1x128xf32>
    %46 = vector.broadcast %45 : vector<1x128xf32> to vector<8x128xf32>
    %47 = arith.addf %44, %46 : vector<8x128xf32>
    %cst_24 = arith.constant 3.000000e-01 : f32
    %48 = vector.broadcast %cst_24 : f32 to vector<8x128xf32>
    %49 = arith.mulf %48, %47 : vector<8x128xf32>
    %50 = arith.addf %0, %49 : vector<8x128xf32>
    %c0_25 = arith.constant 0 : index
    %c0_26 = arith.constant 0 : index
    %51 = vector.load %arg7[%c0_25, %c0_26] : memref<8x128xf32, #tpu.memory_space<vmem>>, vector<8x128xf32>
    tpu.vector_store %arg7[%c0_25, %c0_26], %50 {strides = array<i32>} : memref<8x128xf32, #tpu.memory_space<vmem>>, vector<8x128xf32>,
    return
  }
  func.func @transform_0(%arg0: i32) -> (i32, i32) {
    %c0_i32 = arith.constant 0 : i32
    %c0_i32_0 = arith.constant 0 : i32
    return %arg0, %c0_i32 : i32, i32
  }
  func.func @transform_1(%arg0: i32) -> (i32, i32) {
    %c0_i32 = arith.constant 0 : i32
    %c0_i32_0 = arith.constant 0 : i32
    return %arg0, %c0_i32 : i32, i32
  }
  func.func @transform_2(%arg0: i32) -> (i32, i32) {
    %c0_i32 = arith.constant 0 : i32
    %c0_i32_0 = arith.constant 0 : i32
    %c0_i32_1 = arith.constant 0 : i32
    return %c0_i32, %c0_i32_0 : i32, i32
  }
  func.func @transform_3(%arg0: i32) -> (i32, i32) {
    %c0_i32 = arith.constant 0 : i32
    %c0_i32_0 = arith.constant 0 : i32
    %c0_i32_1 = arith.constant 0 : i32
    return %c0_i32, %c0_i32_0 : i32, i32
  }
  func.func @transform_4(%arg0: i32) -> (i32, i32) {
    %c0_i32 = arith.constant 0 : i32
    %c0_i32_0 = arith.constant 0 : i32
    %c0_i32_1 = arith.constant 0 : i32
    return %c0_i32, %c0_i32_0 : i32, i32
  }
  func.func @transform_5(%arg0: i32) -> (i32, i32) {
    %c0_i32 = arith.constant 0 : i32
    %c0_i32_0 = arith.constant 0 : i32
    %c0_i32_1 = arith.constant 0 : i32
    return %c0_i32, %c0_i32_0 : i32, i32
  }
  func.func @transform_6(%arg0: i32) -> (i32, i32) {
    %c0_i32 = arith.constant 0 : i32
    %c0_i32_0 = arith.constant 0 : i32
    return %arg0, %c0_i32 : i32, i32
  }
}

</mosaic_0001>

<bundles_post_ra>
// kernel: tpu_custom_call.1
= control target key start
LH: loop header
LB: loop body
LE: loop exit
PB: predicated region body
PF: predicated region fallthrough
CT: control target
= control target key end

     0   :  { %11 = vsyncpa [#allocation3], 0  ;;  %s1104_s0 = inlined_call_operand.hbm [shape: f32[8,128], index: 0, kind: input, shape index: {}]   ;;  %s1105_s1 = inlined_call_operand.hbm [shape: s32[8,128], index: 1, kind: input, shape index: {}]   ;;  %s1106_s2 = inlined_call_operand.hbm [shape: bf16[384,128], index: 2, kind: input, shape index: {}]   ;;  %s1107_s3 = inlined_call_operand.vmem [shape: f32[1,128], index: 3, kind: input, shape index: {}]   ;;  %s1108_s4 = inlined_call_operand.hbm [shape: bf16[384,128], index: 4, kind: input, shape index: {}]   ;;  %s1109_s5 = inlined_call_operand.vmem [shape: f32[1,128], index: 5, kind: input, shape index: {}]   ;;  %s1110_s6 = inlined_call_operand.hbm [shape: f32[8,128], index: 6, kind: output, shape index: {}]  }
   0x1   :  { %12 = vsyncpa [#allocation6], 0 }
   0x2   :  { %13 = vsyncpa [#allocation9], 0  ;;  %s31_s23 = sshll.u32 %s1105_s1, 4  ;;  %s32_s23 = int_to_ptr.hbm [resolvable:$true] %s31_s23 }
   0x3   :  { %14 = vsyncpa [#allocation4], 0  ;;  %s1005_s24 = smov [#allocation5]   ;;  %s20_s28 = sshll.u32 %s1104_s0, 4  ;;  %s21_s28 = int_to_ptr.hbm [resolvable:$true] %s20_s28 }
   0x4   :  { %s33_s25 = sshll.u32 %s1005_s24, 4  ;;  %s1006_s29 = smov [#allocation2]   ;;  %s34_s25 = int_to_ptr.vmem [resolvable:$true] %s33_s25 }
   0x5   :  { %36 = dma.hbm_to_vmem [thread:$0]  %s32_s23, 128, %s34_s25, [#allocation6]  }
   0x6   :  { %s22_s30 = sshll.u32 %s1006_s29, 4  ;;  %s41_s9 = sshll.u32 %s1106_s2, 4  ;;  %s23_s30 = int_to_ptr.vmem [resolvable:$true] %s22_s30  ;;  %s42_s9 = int_to_ptr.hbm [resolvable:$true] %s41_s9 }
   0x7   :  { %25 = dma.hbm_to_vmem [thread:$0]  %s21_s28, 128, %s23_s30, [#allocation3]  }
   0x8   :  { %s1007_s1 = smov [#allocation7]   ;;  %s56_s13 = sshll.u32 %s1108_s4, 4  ;;  %s57_s13 = int_to_ptr.hbm [resolvable:$true] %s56_s13 }
   0x9   :  { %s43_s10 = sshll.u32 %s1007_s1, 4  ;;  %s1008_s14 = smov 64   ;;  %s44_s10 = int_to_ptr.vmem [resolvable:$true] %s43_s10 }
   0xa   :  { %s1009_s0 = smov 4   ;;  %s1010_s15 = smov [#allocation8]  }
   0xb   :  { %49 = dma.hbm_to_vmem [thread:$0]  %s42_s9, 3072, %s44_s10, [#allocation6], %s1008_s14, %s1008_s14, %s1009_s0  }
   0xc   :  { %s58_s16 = sshll.u32 %s1010_s15, 4  ;;  %s59_s16 = int_to_ptr.vmem [resolvable:$true] %s58_s16 }
   0xd   :  { %64 = dma.hbm_to_vmem [thread:$0]  %s57_s13, 3072, %s59_s16, [#allocation9], %s1008_s14, %s1008_s14, %s1009_s0  }
   0xe   :  { %997 = dma.done.wait [#allocation3], 128  }
   0xf   :  { %998 = vsyncadd [#allocation3], 4294967168 }
  0x10   :  { %999 = dma.done.wait [#allocation6], 3200  }
  0x11   :  { %1000 = vsyncadd [#allocation6], 4294964096 }
  0x12   :  { %1001 = dma.done.wait [#allocation9], 3072  }
  0x13   :  { %1002 = vsyncadd [#allocation9], 4294964224  ;;  %v827_v0 = vld [vmem:[#allocation7 + $0x38] sm:$0xff]  ;;  %v826_v3 = vld [vmem:[#allocation7 + $0x30] sm:$0xff]  ;;  %vm99_vm0 = vcmask 1040384   ;;  %vm109_vm2 = vcmask 1043456  }
  0x14   :  { %v835_v1 = vld [vmem:[#allocation7 + $0x78] sm:$0xff]  ;;  %312 = vmatpush.bf16.msra.mxu0 %v827_v0  ;;  %v834_v4 = vld [vmem:[#allocation7 + $0x70] sm:$0xff]  ;;  %v825_v6 = vld [vmem:[#allocation7 + $0x28] sm:$0xff]  ;;  %vm100_vm1 = vsmask.f32 256  ;;  %s1011_s18 = smov [#allocation10]  }
  0x15   :  { %v843_v2 = vld [vmem:[#allocation7 + $0xb8] sm:$0xff]  ;;  %325 = vmatpush.bf16.msra.mxu1 %v835_v1  ;;  %v842_v5 = vld [vmem:[#allocation7 + $0xb0] sm:$0xff]  ;;  %v833_v7 = vld [vmem:[#allocation7 + $0x68] sm:$0xff]  ;;  %vm110_vm3 = vsmask.f32 3328  ;;  %s614_s19 = sshll.u32 %s1011_s18, 4  ;;  %s615_s19 = int_to_ptr.vmem [resolvable:$true] %s614_s19 }
  0x16   :  { %338 = vmatpush.bf16.msra.mxu2 %v843_v2  ;;  %v841_v8 = vld [vmem:[#allocation7 + $0xa8] sm:$0xff]  ;;  %v1059_v9 = vld [vmem:[#allocation2] sm:$0xff]  ;;  %v824_v11 = vld [vmem:[#allocation7 + $0x20] sm:$0xff]  ;;  %s616_s22 = sshll.u32 %s1110_s6, 4  ;;  %s617_s22 = int_to_ptr.hbm [resolvable:$true] %s616_s22 }
  0x17   :  { %v86_v10 = vmax.f32 %v1059_v9, 0.0  ;;  %v832_v12 = vld [vmem:[#allocation7 + $0x60] sm:$0xff]  ;;  %v851_v13 = vld [vmem:[#allocation8 + $0x38] sm:$0xff]  ;;  %v850_v16 = vld [vmem:[#allocation8 + $0x30] sm:$0xff] }
  0x18   :  { %313 = vmatpush.bf16.msra.mxu0 %v826_v3  ;;  %v840_v14 = vld [vmem:[#allocation7 + $0xa0] sm:$0xff]  ;;  %567 = vmatpush.bf16.msra.mxu3 %v851_v13  ;;  %v823_v18 = vld [vmem:[#allocation7 + $0x18] sm:$0xff]  ;;  %v822_v24 = vld [vmem:[#allocation7 + $0x10] sm:$0xff] }
  0x19   :  { %326 = vmatpush.bf16.msra.mxu1 %v834_v4  ;;  %v87_v15 = vpack.c.bf16 %v86_v10, %v86_v10  ;;  %v831_v19 = vld [vmem:[#allocation7 + $0x58] sm:$0xff]  ;;  %v830_v25 = vld [vmem:[#allocation7 + $0x50] sm:$0xff]  ;;  %v821_v30 = vld [vmem:[#allocation7 + $0x8] sm:$0xff] }
  0x1a   :  { %339 = vmatpush.bf16.msra.mxu2 %v842_v5  ;;  %v839_v20 = vld [vmem:[#allocation7 + $0x98] sm:$0xff]  ;;  %v838_v26 = vld [vmem:[#allocation7 + $0x90] sm:$0xff]  ;;  %v829_v31 = vld [vmem:[#allocation7 + $0x48] sm:$0xff] }
  0x1b   :  { %v89_v17 = vunpack.c.l.b16 %v87_v15  ;;  %v85_v29 = vld [vmem:[#allocation5] sm:$0xff]  ;;  %v837_v32 = vld [vmem:[#allocation7 + $0x88] sm:$0xff]  ;;  %vm1062_vm4 = vmand %vm99_vm0, %vm100_vm1 }
  0x1c   :  { %314 = vmatpush.bf16.msra.mxu0 %v825_v6  ;;  %568 = vmatpush.bf16.msra.mxu3 %v850_v16  ;;  %vm103_vm5 = vcmp.ge.s32.totalorder %v85_v29, 1  ;;  %vm1066_vm6 = vmand %vm109_vm2, %vm110_vm3  ;;  %vm113_vm7 = vcmp.lt.s32.totalorder %v85_v29, 3  ;;  %v820_v37 = vld [vmem:[#allocation7] sm:$0xff]  ;;  %v859_v42 = vld [vmem:[#allocation8 + $0x78] sm:$0xff] }
  0x1d   :  { %327 = vmatpush.bf16.msra.mxu1 %v833_v7  ;;  %v90_v21 = vpack.c.b16 %v89_v17, %v89_v17  ;;  %v828_v38 = vld [vmem:[#allocation7 + $0x40] sm:$0xff]  ;;  %vm1072_vm8 = vmpackc.low %vm103_vm5, %vm103_vm5  ;;  %v867_v45 = vld [vmem:[#allocation8 + $0xb8] sm:$0xff] }
  0x1e   :  { %340 = vmatpush.bf16.msra.mxu2 %v841_v8  ;;  %v836_v39 = vld [vmem:[#allocation7 + $0x80] sm:$0xff]  ;;  %vm1078_vm9 = vmpackc.low %vm113_vm7, %vm113_vm7  ;;  %v858_v48 = vld [vmem:[#allocation8 + $0x70] sm:$0xff] }
  0x1f   :  { %v92_v22 = vshrl.u32 %v90_v21, 16  ;;  %v95_v23 = vshll.u32 %v90_v21, 16  ;;  %v866_v49 = vld [vmem:[#allocation8 + $0xb0] sm:$0xff]  ;;  %v857_v50 = vld [vmem:[#allocation8 + $0x68] sm:$0xff]  ;;  %v856_v51 = vld [vmem:[#allocation8 + $0x60] sm:$0xff] }
  0x20   :  { %315 = vmatpush.bf16.msra.mxu0 %v824_v11  ;;  %v855_v52 = vld [vmem:[#allocation8 + $0x58] sm:$0xff]  ;;  %v849_v53 = vld [vmem:[#allocation8 + $0x28] sm:$0xff]  ;;  %v854_v54 = vld [vmem:[#allocation8 + $0x50] sm:$0xff] }
  0x21   :  { %328 = vmatpush.bf16.msra.mxu1 %v832_v12  ;;  %v94_v27 = vrot.slane %v92_v22, 7  ;;  %v106_v28 = vrot.slane %v95_v23, 1  ;;  %v865_v55 = vld [vmem:[#allocation8 + $0xa8] sm:$0xff]  ;;  %569 = vmatpush.bf16.msra.mxu3 %v849_v53  ;;  %v848_v56 = vld [vmem:[#allocation8 + $0x20] sm:$0xff]  ;;  %v847_v59 = vld [vmem:[#allocation8 + $0x18] sm:$0xff] }
  0x22   :  { %341 = vmatpush.bf16.msra.mxu2 %v840_v14  ;;  %v853_v57 = vld [vmem:[#allocation8 + $0x48] sm:$0xff]  ;;  %v864_v58 = vld [vmem:[#allocation8 + $0xa0] sm:$0xff]  ;;  %v863_v61 = vld [vmem:[#allocation8 + $0x98] sm:$0xff] }
  0x23   :  { %v97_v33 = vor.u32 %v95_v23, %v94_v27  ;;  %v107_v35 = vor.u32 %v106_v28, %v92_v22  ;;  %v852_v60 = vld [vmem:[#allocation8 + $0x40] sm:$0xff]  ;;  %v846_v62 = vld [vmem:[#allocation8 + $0x10] sm:$0xff]  ;;  %v845_v0 = vld [vmem:[#allocation8 + $0x8] sm:$0xff] }
  0x24   :  { %316 = vmatpush.bf16.msra.mxu0 %v823_v18  ;;  %v862_v63 = vld [vmem:[#allocation8 + $0x90] sm:$0xff]  ;;  %v861_v1 = vld [vmem:[#allocation8 + $0x88] sm:$0xff]  ;;  %v844_v2 = vld [vmem:[#allocation8] sm:$0xff] }
  0x25   :  { %329 = vmatpush.bf16.msra.mxu1 %v831_v19  ;;  %v102_v40 = vsel %vm1062_vm4, 0, %v97_v33  ;;  %v112_v43 = vsel %vm1066_vm6, %v107_v35, 0  ;;  %570 = vmatpush.bf16.msra.mxu3 %v848_v56  ;;  %v860_v3 = vld [vmem:[#allocation8 + $0x80] sm:$0xff]  ;;  %v875_v4 = vld [vmem:[%s1107_s3] ss:$0 sm:$0xff] }
  0x26   :  { %342 = vmatpush.bf16.msra.mxu2 %v839_v20  ;;  %v105_v46 = vsel %vm1072_vm8, %v102_v40, 0  ;;  %v115_v47 = vsel %vm1078_vm9, %v112_v43, 0 }
  0x28   :  { %317 = vmatpush.bf16.msra.mxu0 %v822_v24 }
  0x29   :  { %330 = vmatpush.bf16.msra.mxu1 %v830_v25  ;;  %571 = vmatpush.bf16.msra.mxu3 %v847_v59 }
  0x2a   :  { %343 = vmatpush.bf16.msra.mxu2 %v838_v26 }
  0x2c   :  { %318 = vmatpush.bf16.msra.mxu0 %v821_v30 }
  0x2d   :  { %331 = vmatpush.bf16.msra.mxu1 %v829_v31  ;;  %572 = vmatpush.bf16.msra.mxu3 %v846_v62 }
  0x2e   :  { %344 = vmatpush.bf16.msra.mxu2 %v837_v32  ;;  %v876_v32 = vld [vmem:[%s1109_s5] ss:$0 sm:$0xff] }
  0x30   :  { %319 = vmatpush.bf16.msra.mxu0 %v820_v37 }
  0x31   :  { %332 = vmatpush.bf16.msra.mxu1 %v828_v38  ;;  %573 = vmatpush.bf16.msra.mxu3 %v845_v0 }
  0x32   :  { %345 = vmatpush.bf16.msra.mxu2 %v836_v39 }
  0x33   :  { %320 = vmatmul.bf16.vlgmr.msra.gmra.mxu0 %v105_v46 }
  0x34   :  { %580 = vmatpush.bf16.msrb.mxu0 %v859_v42  ;;  %333 = vmatmul.bf16.vlgmr.msra.gmra.mxu1 %v87_v15 }
  0x35   :  { %593 = vmatpush.bf16.msrb.mxu1 %v867_v45  ;;  %346 = vmatmul.bf16.vlgmr.msra.gmra.mxu2 %v115_v47 }
  0x36   :  { %574 = vmatpush.bf16.msra.mxu3 %v844_v2 }
  0x38   :  { %581 = vmatpush.bf16.msrb.mxu0 %v858_v48 }
  0x39   :  { %594 = vmatpush.bf16.msrb.mxu1 %v866_v49 }
  0x3c   :  { %582 = vmatpush.bf16.msrb.mxu0 %v857_v50 }
  0x3d   :  { %595 = vmatpush.bf16.msrb.mxu1 %v865_v55 }
  0x40   :  { %583 = vmatpush.bf16.msrb.mxu0 %v856_v51 }
  0x41   :  { %596 = vmatpush.bf16.msrb.mxu1 %v864_v58 }
  0x44   :  { %584 = vmatpush.bf16.msrb.mxu0 %v855_v52 }
  0x45   :  { %597 = vmatpush.bf16.msrb.mxu1 %v863_v61 }
  0x48   :  { %585 = vmatpush.bf16.msrb.mxu0 %v854_v54 }
  0x49   :  { %598 = vmatpush.bf16.msrb.mxu1 %v862_v63 }
  0x4c   :  { %586 = vmatpush.bf16.msrb.mxu0 %v853_v57 }
  0x4d   :  { %599 = vmatpush.bf16.msrb.mxu1 %v861_v1 }
  0x50   :  { %587 = vmatpush.bf16.msrb.mxu0 %v852_v60 }
  0x51   :  { %600 = vmatpush.bf16.msrb.mxu1 %v860_v3 }
  0xb0   :  { %v321_v5 = vpop.f32.mrf.mxu0 }
  0xb1   :  { %v334_v6 = vpop.f32.mrf.mxu1  ;;  %v322_v7 = vadd.f32 %v875_v4, %v321_v5 }
  0xb3   :  { %v335_v8 = vadd.f32 %v334_v6, %v322_v7 }
  0xb8   :  { %v347_v10 = vpop.f32.mrf.mxu2  ;;  %v323_v12 = vpop.f32.mrf.mxu0 }
  0xb9   :  { %v348_v11 = vadd.f32 %v347_v10, %v335_v8  ;;  %v336_v13 = vpop.f32.mrf.mxu1 }
  0xbb   :  { %v351_v14 = vmax.f32 %v348_v11, 0.0 }
  0xbd   :  { %v352_v15 = vpack.c.bf16 %v351_v14, %v351_v14 }
  0xbf   :  { %v354_v16 = vunpack.c.l.b16 %v352_v15  ;;  %588 = vmatmul.bf16.vlgmr.msrb.gmra.mxu0 %v352_v15 }
  0xc0   :  { %v349_v17 = vpop.f32.mrf.mxu2 }
  0xc1   :  { %v355_v18 = vpack.c.b16 %v354_v16, %v354_v16 }
  0xc3   :  { %v357_v19 = vshrl.u32 %v355_v18, 16  ;;  %v360_v20 = vshll.u32 %v355_v18, 16 }
  0xc5   :  { %v359_v21 = vrot.slane %v357_v19, 7  ;;  %v366_v22 = vrot.slane %v360_v20, 1 }
  0xc7   :  { %v362_v23 = vor.u32 %v360_v20, %v359_v21  ;;  %v367_v24 = vor.u32 %v366_v22, %v357_v19 }
  0xc9   :  { %v364_v25 = vsel %vm1062_vm4, 0, %v362_v23  ;;  %v369_v26 = vsel %vm1066_vm6, %v367_v24, 0 }
  0xca   :  { %v365_v27 = vsel %vm1072_vm8, %v364_v25, 0  ;;  %v370_v28 = vsel %vm1078_vm9, %v369_v26, 0 }
  0xcb   :  { %575 = vmatmul.bf16.vlgmr.msra.gmra.mxu3 %v365_v27  ;;  %601 = vmatmul.bf16.vlgmr.msrb.gmra.mxu1 %v370_v28 }
 0x13c   :  { %v589_v29 = vpop.f32.mrf.mxu0 }
 0x144   :  { %v591_v30 = vpop.f32.mrf.mxu0 }
 0x148   :  { %v602_v31 = vpop.f32.mrf.mxu1 }
 0x14e   :  { %v576_v33 = vpop.f32.mrf.mxu3 }
 0x14f   :  { %v577_v34 = vadd.f32 %v876_v32, %v576_v33 }
 0x150   :  { %v604_v35 = vpop.f32.mrf.mxu1 }
 0x151   :  { %v590_v36 = vadd.f32 %v589_v29, %v577_v34 }
 0x153   :  { %v603_v37 = vadd.f32 %v602_v31, %v590_v36 }
 0x155   :  { %v606_v38 = vmul.f32 0.3, %v603_v37 }
 0x156   :  { %v578_v39 = vpop.f32.mrf.mxu3 }
 0x157   :  { %v607_v40 = vadd.f32 %v606_v38, %v1059_v9 }
 0x159   :  { %608 = vst [vmem:[#allocation10] sm:$0xff] %v607_v40 }
 0x15a   :  { %619 = dma.vmem_to_hbm [thread:$0]  %s615_s19, 128, %s617_s22, [#allocation4]  }
 0x15b   :  { %1003 = dma.done.wait [#allocation4], 128  }
 0x15c   :  { %1004 = vsyncadd [#allocation4], 4294967168 }
 0x15d   :  { %624 = vsyncpa [#allocation3], 1 }
 0x15e   :  { %625 = vsyncpa [#allocation6], 1 }
 0x15f   :  { %626 = vsyncpa [#allocation9], 1 }
 0x160   :  { %627 = vsyncpa [#allocation4], 1 }

</bundles_post_ra>
